<compile_context>
chip_gen: v5e
topology: v5e:2x2
jax: 0.10.0
libtpu: 0.0.40
codegen_flags: <defaults>
</compile_context>

<pallas_src>
import functools

import jax
import jax.numpy as jnp
from jax import lax
from jax.experimental import pallas as pl
from jax.experimental.pallas import tpu as pltpu

VOCAB = 10000
EMB_DIM = 100     # embedding_dim
HID_DIM = 64      # hidden_dim


def _lstm_classifier_kernel(x_ref, wih_ref, b_ref, whh_ref, wc_ref, bc_ref,
                            out_ref, xp_sc, h_sc, c_sc, *, seq_len):
    """One (batch-block, time-chunk) grid step of the LSTM recurrence + classifier.

    x_ref   : (Tc, Bb, Ep)  bf16  time-major padded embeddings for this chunk
    wih_ref : (Ep, 4H)      bf16  input->gates weight (transposed, zero-padded rows)
    b_ref   : (1, 4H)       f32   b_ih + b_hh
    whh_ref : (H, 4H)       bf16  hidden->gates weight (transposed)
    wc_ref  : (H, H)        f32   classifier weight (transposed)
    bc_ref  : (1, H)        f32   classifier bias
    out_ref : (Bb, H)       f32   tanh(classifier(h_T))
    xp_sc   : (Tc, Bb, 4H)  f32   hoisted input projection for this chunk
    h_sc/c_sc: (Bb, H)      f32   recurrent state carried across time chunks
    """
    t_blk = pl.program_id(1)
    n_t = pl.num_programs(1)
    Tc, Bb, Ep = x_ref.shape
    H4 = wih_ref.shape[-1]
    H = H4 // 4

    @pl.when(t_blk == 0)
    def _():
        h_sc[...] = jnp.zeros_like(h_sc)
        c_sc[...] = jnp.zeros_like(c_sc)

    # Hoisted input projection for the whole chunk: one bf16 MXU matmul, f32 acc,
    # bias added once (broadcast hoisted out of the recurrence).
    x_all = x_ref[...].reshape(Tc * Bb, Ep)
    xp = jnp.dot(x_all, wih_ref[...], preferred_element_type=jnp.float32) + b_ref[...]
    xp_sc[...] = xp.reshape(Tc, Bb, H4)

    whh = whh_ref[...]                       # bf16 (H, 4H) = 32 KiB, stays resident
    base = t_blk * Tc

    def step(t, carry):
        h, c = carry
        # gates = xp[t] + h_{t-1} @ W_hh^T  -> (Bb, 4H); PyTorch gate order i, f, g, o.
        gates = xp_sc[t] + jnp.dot(h.astype(jnp.bfloat16), whh,
                                   preferred_element_type=jnp.float32)
        i_g = jax.nn.sigmoid(gates[:, 0 * H:1 * H])
        f_g = jax.nn.sigmoid(gates[:, 1 * H:2 * H])
        g_g = jnp.tanh(gates[:, 2 * H:3 * H])
        o_g = jax.nn.sigmoid(gates[:, 3 * H:4 * H])
        c_new = f_g * c + i_g * g_g
        h_new = o_g * jnp.tanh(c_new)
        # Mask out padded timesteps of the final (partial) chunk.
        valid = (base + t) < seq_len
        return jnp.where(valid, h_new, h), jnp.where(valid, c_new, c)

    h, c = lax.fori_loop(0, Tc, step, (h_sc[...], c_sc[...]), unroll=min(Tc, 8))
    h_sc[...] = h
    c_sc[...] = c

    @pl.when(t_blk == n_t - 1)
    def _():
        out_ref[...] = jnp.tanh(
            jnp.dot(h_sc[...], wc_ref[...], preferred_element_type=jnp.float32)
            + bc_ref[...])


def sentiment_analyzer_forward(token_ids, params, *, t_chunk=None):
    """token_ids: int32 [B, T].  Returns float32 [B, HID_DIM]."""
    emb_table = params["embedding"]          # (VOCAB, E)
    w_ih = params["w_ih"]                    # (4H, E)  PyTorch layout, gate order i,f,g,o
    w_hh = params["w_hh"]                    # (4H, H)
    b_ih = params["b_ih"]                    # (4H,)
    b_hh = params["b_hh"]                    # (4H,)
    w_c = params["w_c"]                      # (H, H)
    b_c = params["b_c"]                      # (H,)

    B, T = token_ids.shape
    E = emb_table.shape[1]
    H = w_hh.shape[1]
    H4 = 4 * H

    Ep = 128                                 # pad E=100 -> 128 (aligned contraction)
    Bp = max(8, -(-B // 8) * 8)              # batch padded to 8 sublanes
    if Bp > 128:                             # multiple batch blocks ("parallel" axis)
        b_chunk = 128
        Bp = -(-Bp // 128) * 128
    else:
        b_chunk = Bp
    n_b = Bp // b_chunk

    if t_chunk is None:
        t_chunk = min(T, 32)
    t_chunk = max(1, min(t_chunk, T))
    T_pad = -(-T // t_chunk) * t_chunk
    n_t = T_pad // t_chunk

    # Embedding gather directly into time-major layout, single fused pad, bf16 in HBM.
    # TODO(synk): the string tokenization (lower/split, hash(word) % 10000, ragged
    #             padding) is host-side Python with no tensor-op equivalent; int32
    #             token ids are fed directly.
    # TODO(synk): the embedding row gather could be fused into the kernel with
    #             num_scalar_prefetch token ids + a pl.Element row-gather BlockSpec.
    x_tbe = jnp.take(emb_table, token_ids.T, axis=0).astype(jnp.bfloat16)   # (T, B, E)
    x_pad = jnp.pad(x_tbe, ((0, T_pad - T), (0, Bp - B), (0, Ep - E)))      # (Tp,Bp,Ep)

    # Weights: transpose to (in, 4H); natural 4H=256 lane packing (no per-gate padding).
    wih_pad = jnp.zeros((Ep, H4), jnp.float32).at[:E, :].set(w_ih.T).astype(jnp.bfloat16)
    whh_t = w_hh.T.astype(jnp.bfloat16)                                     # (H, 4H)
    b_sum = (b_ih + b_hh).reshape(1, H4).astype(jnp.float32)
    wc_t = w_c.T.astype(jnp.float32)                                        # (H, H)
    bc = b_c.reshape(1, H).astype(jnp.float32)

    kernel = functools.partial(_lstm_classifier_kernel, seq_len=T)

    out = pl.pallas_call(
        kernel,
        out_shape=jax.ShapeDtypeStruct((Bp, H), jnp.float32),
        grid_spec=pltpu.PrefetchScalarGridSpec(
            num_scalar_prefetch=0,
            grid=(n_b, n_t),
            in_specs=[
                pl.BlockSpec((t_chunk, b_chunk, Ep), lambda b, t: (t, b, 0)),  # x chunk
                pl.BlockSpec((Ep, H4), lambda b, t: (0, 0)),                   # W_ih^T
                pl.BlockSpec((1, H4), lambda b, t: (0, 0)),                    # b_ih+b_hh
                pl.BlockSpec((H, H4), lambda b, t: (0, 0)),                    # W_hh^T
                pl.BlockSpec((H, H), lambda b, t: (0, 0)),                     # W_c^T
                pl.BlockSpec((1, H), lambda b, t: (0, 0)),                     # b_c
            ],
            out_specs=pl.BlockSpec((b_chunk, H), lambda b, t: (b, 0)),
            scratch_shapes=[
                pltpu.VMEM((t_chunk, b_chunk, H4), jnp.float32),   # hoisted projection
                pltpu.VMEM((b_chunk, H), jnp.float32),             # h carry
                pltpu.VMEM((b_chunk, H), jnp.float32),             # c carry
            ],
        ),
        compiler_params=pltpu.CompilerParams(
            dimension_semantics=("parallel", "arbitrary"),
            vmem_limit_bytes=64 * 1024 * 1024),
    )(x_pad, wih_pad, b_sum, whh_t, wc_t, bc)

    return out[:B, :]


def _reference_forward(token_ids, params):
    """Pure-JAX f32 reference mirroring the PyTorch module (for validation)."""
    emb = jnp.take(params["embedding"], token_ids, axis=0)     # (B, T, E)
    B, T, _ = emb.shape
    H = HID_DIM
    b = params["b_ih"] + params["b_hh"]
    h = jnp.zeros((B, H), jnp.float32)
    c = jnp.zeros((B, H), jnp.float32)
    for t in range(T):
        g = emb[:, t, :] @ params["w_ih"].T + h @ params["w_hh"].T + b
        i = jax.nn.sigmoid(g[:, 0:H])
        f = jax.nn.sigmoid(g[:, H:2 * H])
        gg = jnp.tanh(g[:, 2 * H:3 * H])
        o = jax.nn.sigmoid(g[:, 3 * H:4 * H])
        c = f * c + i * gg
        h = o * jnp.tanh(c)
    return jnp.tanh(h @ params["w_c"].T + params["b_c"])


def init_params(key):
    ks = jax.random.split(key, 7)
    H, E = HID_DIM, EMB_DIM
    scale = 0.1
    return {
        "embedding": scale * jax.random.normal(ks[0], (VOCAB, E), jnp.float32),
        "w_ih": scale * jax.random.normal(ks[1], (4 * H, E), jnp.float32),
        "w_hh": scale * jax.random.normal(ks[2], (4 * H, H), jnp.float32),
        "b_ih": scale * jax.random.normal(ks[3], (4 * H,), jnp.float32),
        "b_hh": scale * jax.random.normal(ks[4], (4 * H,), jnp.float32),
        "w_c": scale * jax.random.normal(ks[5], (H, H), jnp.float32),
        "b_c": scale * jax.random.normal(ks[6], (H,), jnp.float32),
    }


if __name__ == "__main__":
    key = jax.random.PRNGKey(0)
    pkey, tkey = jax.random.split(key)

    params = init_params(pkey)

    B, T = 2, 8
    token_ids = jax.random.randint(tkey, (B, T), 0, VOCAB, dtype=jnp.int32)

    # t_chunk=4 -> grid=(1, 2): exercises the chunked recurrence / h,c carry path.
    sentiment = sentiment_analyzer_forward(token_ids, params, t_chunk=4)
    sentiment = jax.block_until_ready(sentiment)

    assert sentiment.shape == (B, HID_DIM)
    assert sentiment.dtype == jnp.float32
    assert bool(jnp.all(jnp.isfinite(sentiment)))

    ref = _reference_forward(token_ids, params)
    max_err = float(jnp.max(jnp.abs(sentiment - ref)))
    assert max_err < 2e-2, f"kernel/reference mismatch: max_err={max_err}"

    print("KERNEL_OK")
</pallas_src>

<mosaic_0001>
module attributes {stable_mosaic.version = 11 : i64} {
  func.func @_lstm_classifier_kernel(%arg0: i32, %arg1: i32, %arg2: memref<4x8x128xbf16, #tpu.memory_space<vmem>>, %arg3: memref<128x256xbf16, #tpu.memory_space<vmem>>, %arg4: memref<1x256xf32, #tpu.memory_space<vmem>>, %arg5: memref<64x256xbf16, #tpu.memory_space<vmem>>, %arg6: memref<64x64xf32, #tpu.memory_space<vmem>>, %arg7: memref<1x64xf32, #tpu.memory_space<vmem>>, %arg8: memref<8x64xf32, #tpu.memory_space<vmem>>, %arg9: memref<4x8x256xf32, #tpu.memory_space<vmem>>, %arg10: memref<8x64xf32, #tpu.memory_space<vmem>>, %arg11: memref<8x64xf32, #tpu.memory_space<vmem>>) attributes {dimension_semantics = [#tpu.dimension_semantics<parallel>, #tpu.dimension_semantics<arbitrary>], iteration_bounds = array<i64: 1, 2>, scalar_prefetch = 0 : i64, scratch_operands = 3 : i64, tpu.core_type = #tpu.core_type<tc>, window_params = [{transform_indices = @transform_0, window_bounds = array<i64: 4, 8, 128>}, {pipeline_mode = #tpu.pipeline_mode<synchronous>, transform_indices = @transform_1, window_bounds = array<i64: 128, 256>}, {pipeline_mode = #tpu.pipeline_mode<synchronous>, transform_indices = @transform_2, window_bounds = array<i64: 1, 256>}, {pipeline_mode = #tpu.pipeline_mode<synchronous>, transform_indices = @transform_3, window_bounds = array<i64: 64, 256>}, {pipeline_mode = #tpu.pipeline_mode<synchronous>, transform_indices = @transform_4, window_bounds = array<i64: 64, 64>}, {pipeline_mode = #tpu.pipeline_mode<synchronous>, transform_indices = @transform_5, window_bounds = array<i64: 1, 64>}, {transform_indices = @transform_6, window_bounds = array<i64: 8, 64>}]} {
    %c0_i32 = arith.constant 0 : i32
    %0 = arith.cmpi eq, %arg1, %c0_i32 : i32
    %1 = arith.extui %0 : i1 to i32
    %c0_i32_0 = arith.constant 0 : i32
    %2 = arith.cmpi ne, %1, %c0_i32_0 : i32
    scf.if %2 {
      %cst_51 = arith.constant 0.000000e+00 : f32
      %161 = vector.broadcast %cst_51 : f32 to vector<8x64xf32>
      %c0_52 = arith.constant 0 : index
      %c0_53 = arith.constant 0 : index
      %162 = vector.load %arg10[%c0_52, %c0_53] : memref<8x64xf32, #tpu.memory_space<vmem>>, vector<8x64xf32>
      tpu.vector_store %arg10[%c0_52, %c0_53], %161 {strides = array<i32>} : memref<8x64xf32, #tpu.memory_space<vmem>>, vector<8x64xf32>,
      %cst_54 = arith.constant 0.000000e+00 : f32
      %163 = vector.broadcast %cst_54 : f32 to vector<8x64xf32>
      %c0_55 = arith.constant 0 : index
      %c0_56 = arith.constant 0 : index
      %164 = vector.load %arg11[%c0_55, %c0_56] : memref<8x64xf32, #tpu.memory_space<vmem>>, vector<8x64xf32>
      tpu.vector_store %arg11[%c0_55, %c0_56], %163 {strides = array<i32>} : memref<8x64xf32, #tpu.memory_space<vmem>>, vector<8x64xf32>,
    } else {
    }
    %c0 = arith.constant 0 : index
    %c0_1 = arith.constant 0 : index
    %c0_2 = arith.constant 0 : index
    %3 = vector.load %arg2[%c0, %c0_1, %c0_2] : memref<4x8x128xbf16, #tpu.memory_space<vmem>>, vector<4x8x128xbf16>
    %4 = vector.shape_cast %3 : vector<4x8x128xbf16> to vector<32x128xbf16>
    %c0_3 = arith.constant 0 : index
    %c0_4 = arith.constant 0 : index
    %5 = vector.load %arg3[%c0_3, %c0_4] : memref<128x256xbf16, #tpu.memory_space<vmem>>, vector<128x256xbf16>
    %cst = arith.constant dense<0.000000e+00> : vector<32x256xf32>
    %6 = tpu.matmul %4, %5, %cst {dimension_numbers = #tpu.dot_dimension_numbers<[1], [0], [0], [1], [0, 0, 1, 1], [], []>} : vector<32x128xbf16>, vector<128x256xbf16>, vector<32x256xf32> -> vector<32x256xf32>
    %c0_5 = arith.constant 0 : index
    %c0_6 = arith.constant 0 : index
    %7 = vector.load %arg4[%c0_5, %c0_6] : memref<1x256xf32, #tpu.memory_space<vmem>>, vector<1x256xf32>
    %8 = vector.broadcast %7 : vector<1x256xf32> to vector<32x256xf32>
    %9 = arith.addf %6, %8 : vector<32x256xf32>
    %10 = vector.shape_cast %9 : vector<32x256xf32> to vector<4x8x256xf32>
    %c0_7 = arith.constant 0 : index
    %c0_8 = arith.constant 0 : index
    %c0_9 = arith.constant 0 : index
    %11 = vector.load %arg9[%c0_7, %c0_8, %c0_9] : memref<4x8x256xf32, #tpu.memory_space<vmem>>, vector<4x8x256xf32>
    tpu.vector_store %arg9[%c0_7, %c0_8, %c0_9], %10 {strides = array<i32>} : memref<4x8x256xf32, #tpu.memory_space<vmem>>, vector<4x8x256xf32>,
    %c0_10 = arith.constant 0 : index
    %c0_11 = arith.constant 0 : index
    %12 = vector.load %arg5[%c0_10, %c0_11] : memref<64x256xbf16, #tpu.memory_space<vmem>>, vector<64x256xbf16>
    %c4_i32 = arith.constant 4 : i32
    %13 = arith.muli %arg1, %c4_i32 : i32
    %c0_12 = arith.constant 0 : index
    %c0_13 = arith.constant 0 : index
    %14 = vector.load %arg10[%c0_12, %c0_13] : memref<8x64xf32, #tpu.memory_space<vmem>>, vector<8x64xf32>
    %c0_14 = arith.constant 0 : index
    %c0_15 = arith.constant 0 : index
    %15 = vector.load %arg11[%c0_14, %c0_15] : memref<8x64xf32, #tpu.memory_space<vmem>>, vector<8x64xf32>
    %c0_i32_16 = arith.constant 0 : i32
    %16 = arith.index_cast %c0_i32_16 : i32 to index
    %c0_17 = arith.constant 0 : index
    %c0_18 = arith.constant 0 : index
    %17 = vector.load %arg9[%16, %c0_17, %c0_18] : memref<4x8x256xf32, #tpu.memory_space<vmem>>, vector<1x8x256xf32>
    %18 = vector.shape_cast %17 : vector<1x8x256xf32> to vector<8x256xf32>
    %19 = arith.truncf %14 : vector<8x64xf32> to vector<8x64xbf16>
    %cst_19 = arith.constant dense<0.000000e+00> : vector<8x256xf32>
    %20 = tpu.matmul %19, %12, %cst_19 {dimension_numbers = #tpu.dot_dimension_numbers<[1], [0], [0], [1], [0, 0, 1, 1], [], []>} : vector<8x64xbf16>, vector<64x256xbf16>, vector<8x256xf32> -> vector<8x256xf32>
    %21 = arith.addf %18, %20 : vector<8x256xf32>
    %22 = vector.extract_strided_slice %21 {offsets = [0, 0], sizes = [8, 64], strides = [1, 1]} : vector<8x256xf32> to vector<8x64xf32>
    %23 = arith.negf %22 : vector<8x64xf32>
    %24 = math.exp %23 : vector<8x64xf32>
    %cst_20 = arith.constant 1.000000e+00 : f32
    %25 = vector.broadcast %cst_20 : f32 to vector<8x64xf32>
    %26 = arith.addf %25, %24 : vector<8x64xf32>
    %27 = arith.divf %25, %26 : vector<8x64xf32>
    %28 = vector.extract_strided_slice %21 {offsets = [0, 64], sizes = [8, 64], strides = [1, 1]} : vector<8x256xf32> to vector<8x64xf32>
    %29 = arith.negf %28 : vector<8x64xf32>
    %30 = math.exp %29 : vector<8x64xf32>
    %cst_21 = arith.constant 1.000000e+00 : f32
    %31 = vector.broadcast %cst_21 : f32 to vector<8x64xf32>
    %32 = arith.addf %31, %30 : vector<8x64xf32>
    %33 = arith.divf %31, %32 : vector<8x64xf32>
    %34 = vector.extract_strided_slice %21 {offsets = [0, 128], sizes = [8, 64], strides = [1, 1]} : vector<8x256xf32> to vector<8x64xf32>
    %35 = math.tanh %34 : vector<8x64xf32>
    %36 = vector.extract_strided_slice %21 {offsets = [0, 192], sizes = [8, 64], strides = [1, 1]} : vector<8x256xf32> to vector<8x64xf32>
    %37 = arith.negf %36 : vector<8x64xf32>
    %38 = math.exp %37 : vector<8x64xf32>
    %cst_22 = arith.constant 1.000000e+00 : f32
    %39 = vector.broadcast %cst_22 : f32 to vector<8x64xf32>
    %40 = arith.addf %39, %38 : vector<8x64xf32>
    %41 = arith.divf %39, %40 : vector<8x64xf32>
    %42 = arith.mulf %33, %15 : vector<8x64xf32>
    %43 = arith.mulf %27, %35 : vector<8x64xf32>
    %44 = arith.addf %42, %43 : vector<8x64xf32>
    %45 = math.tanh %44 : vector<8x64xf32>
    %46 = arith.mulf %41, %45 : vector<8x64xf32>
    %47 = arith.addi %13, %c0_i32_16 : i32
    %c8_i32 = arith.constant 8 : i32
    %48 = arith.cmpi slt, %47, %c8_i32 : i32
    %49 = arith.select %48, %46, %14 : vector<8x64xf32>
    %50 = arith.select %48, %44, %15 : vector<8x64xf32>
    %c1_i32 = arith.constant 1 : i32
    %51 = arith.index_cast %c1_i32 : i32 to index
    %c0_23 = arith.constant 0 : index
    %c0_24 = arith.constant 0 : index
    %52 = vector.load %arg9[%51, %c0_23, %c0_24] : memref<4x8x256xf32, #tpu.memory_space<vmem>>, vector<1x8x256xf32>
    %53 = vector.shape_cast %52 : vector<1x8x256xf32> to vector<8x256xf32>
    %54 = arith.truncf %49 : vector<8x64xf32> to vector<8x64xbf16>
    %cst_25 = arith.constant dense<0.000000e+00> : vector<8x256xf32>
    %55 = tpu.matmul %54, %12, %cst_25 {dimension_numbers = #tpu.dot_dimension_numbers<[1], [0], [0], [1], [0, 0, 1, 1], [], []>} : vector<8x64xbf16>, vector<64x256xbf16>, vector<8x256xf32> -> vector<8x256xf32>
    %56 = arith.addf %53, %55 : vector<8x256xf32>
    %57 = vector.extract_strided_slice %56 {offsets = [0, 0], sizes = [8, 64], strides = [1, 1]} : vector<8x256xf32> to vector<8x64xf32>
    %58 = arith.negf %57 : vector<8x64xf32>
    %59 = math.exp %58 : vector<8x64xf32>
    %cst_26 = arith.constant 1.000000e+00 : f32
    %60 = vector.broadcast %cst_26 : f32 to vector<8x64xf32>
    %61 = arith.addf %60, %59 : vector<8x64xf32>
    %62 = arith.divf %60, %61 : vector<8x64xf32>
    %63 = vector.extract_strided_slice %56 {offsets = [0, 64], sizes = [8, 64], strides = [1, 1]} : vector<8x256xf32> to vector<8x64xf32>
    %64 = arith.negf %63 : vector<8x64xf32>
    %65 = math.exp %64 : vector<8x64xf32>
    %cst_27 = arith.constant 1.000000e+00 : f32
    %66 = vector.broadcast %cst_27 : f32 to vector<8x64xf32>
    %67 = arith.addf %66, %65 : vector<8x64xf32>
    %68 = arith.divf %66, %67 : vector<8x64xf32>
    %69 = vector.extract_strided_slice %56 {offsets = [0, 128], sizes = [8, 64], strides = [1, 1]} : vector<8x256xf32> to vector<8x64xf32>
    %70 = math.tanh %69 : vector<8x64xf32>
    %71 = vector.extract_strided_slice %56 {offsets = [0, 192], sizes = [8, 64], strides = [1, 1]} : vector<8x256xf32> to vector<8x64xf32>
    %72 = arith.negf %71 : vector<8x64xf32>
    %73 = math.exp %72 : vector<8x64xf32>
    %cst_28 = arith.constant 1.000000e+00 : f32
    %74 = vector.broadcast %cst_28 : f32 to vector<8x64xf32>
    %75 = arith.addf %74, %73 : vector<8x64xf32>
    %76 = arith.divf %74, %75 : vector<8x64xf32>
    %77 = arith.mulf %68, %50 : vector<8x64xf32>
    %78 = arith.mulf %62, %70 : vector<8x64xf32>
    %79 = arith.addf %77, %78 : vector<8x64xf32>
    %80 = math.tanh %79 : vector<8x64xf32>
    %81 = arith.mulf %76, %80 : vector<8x64xf32>
    %82 = arith.addi %13, %c1_i32 : i32
    %c8_i32_29 = arith.constant 8 : i32
    %83 = arith.cmpi slt, %82, %c8_i32_29 : i32
    %84 = arith.select %83, %81, %49 : vector<8x64xf32>
    %85 = arith.select %83, %79, %50 : vector<8x64xf32>
    %c2_i32 = arith.constant 2 : i32
    %86 = arith.index_cast %c2_i32 : i32 to index
    %c0_30 = arith.constant 0 : index
    %c0_31 = arith.constant 0 : index
    %87 = vector.load %arg9[%86, %c0_30, %c0_31] : memref<4x8x256xf32, #tpu.memory_space<vmem>>, vector<1x8x256xf32>
    %88 = vector.shape_cast %87 : vector<1x8x256xf32> to vector<8x256xf32>
    %89 = arith.truncf %84 : vector<8x64xf32> to vector<8x64xbf16>
    %cst_32 = arith.constant dense<0.000000e+00> : vector<8x256xf32>
    %90 = tpu.matmul %89, %12, %cst_32 {dimension_numbers = #tpu.dot_dimension_numbers<[1], [0], [0], [1], [0, 0, 1, 1], [], []>} : vector<8x64xbf16>, vector<64x256xbf16>, vector<8x256xf32> -> vector<8x256xf32>
    %91 = arith.addf %88, %90 : vector<8x256xf32>
    %92 = vector.extract_strided_slice %91 {offsets = [0, 0], sizes = [8, 64], strides = [1, 1]} : vector<8x256xf32> to vector<8x64xf32>
    %93 = arith.negf %92 : vector<8x64xf32>
    %94 = math.exp %93 : vector<8x64xf32>
    %cst_33 = arith.constant 1.000000e+00 : f32
    %95 = vector.broadcast %cst_33 : f32 to vector<8x64xf32>
    %96 = arith.addf %95, %94 : vector<8x64xf32>
    %97 = arith.divf %95, %96 : vector<8x64xf32>
    %98 = vector.extract_strided_slice %91 {offsets = [0, 64], sizes = [8, 64], strides = [1, 1]} : vector<8x256xf32> to vector<8x64xf32>
    %99 = arith.negf %98 : vector<8x64xf32>
    %100 = math.exp %99 : vector<8x64xf32>
    %cst_34 = arith.constant 1.000000e+00 : f32
    %101 = vector.broadcast %cst_34 : f32 to vector<8x64xf32>
    %102 = arith.addf %101, %100 : vector<8x64xf32>
    %103 = arith.divf %101, %102 : vector<8x64xf32>
    %104 = vector.extract_strided_slice %91 {offsets = [0, 128], sizes = [8, 64], strides = [1, 1]} : vector<8x256xf32> to vector<8x64xf32>
    %105 = math.tanh %104 : vector<8x64xf32>
    %106 = vector.extract_strided_slice %91 {offsets = [0, 192], sizes = [8, 64], strides = [1, 1]} : vector<8x256xf32> to vector<8x64xf32>
    %107 = arith.negf %106 : vector<8x64xf32>
    %108 = math.exp %107 : vector<8x64xf32>
    %cst_35 = arith.constant 1.000000e+00 : f32
    %109 = vector.broadcast %cst_35 : f32 to vector<8x64xf32>
    %110 = arith.addf %109, %108 : vector<8x64xf32>
    %111 = arith.divf %109, %110 : vector<8x64xf32>
    %112 = arith.mulf %103, %85 : vector<8x64xf32>
    %113 = arith.mulf %97, %105 : vector<8x64xf32>
    %114 = arith.addf %112, %113 : vector<8x64xf32>
    %115 = math.tanh %114 : vector<8x64xf32>
    %116 = arith.mulf %111, %115 : vector<8x64xf32>
    %117 = arith.addi %13, %c2_i32 : i32
    %c8_i32_36 = arith.constant 8 : i32
    %118 = arith.cmpi slt, %117, %c8_i32_36 : i32
    %119 = arith.select %118, %116, %84 : vector<8x64xf32>
    %120 = arith.select %118, %114, %85 : vector<8x64xf32>
    %c3_i32 = arith.constant 3 : i32
    %121 = arith.index_cast %c3_i32 : i32 to index
    %c0_37 = arith.constant 0 : index
    %c0_38 = arith.constant 0 : index
    %122 = vector.load %arg9[%121, %c0_37, %c0_38] : memref<4x8x256xf32, #tpu.memory_space<vmem>>, vector<1x8x256xf32>
    %123 = vector.shape_cast %122 : vector<1x8x256xf32> to vector<8x256xf32>
    %124 = arith.truncf %119 : vector<8x64xf32> to vector<8x64xbf16>
    %cst_39 = arith.constant dense<0.000000e+00> : vector<8x256xf32>
    %125 = tpu.matmul %124, %12, %cst_39 {dimension_numbers = #tpu.dot_dimension_numbers<[1], [0], [0], [1], [0, 0, 1, 1], [], []>} : vector<8x64xbf16>, vector<64x256xbf16>, vector<8x256xf32> -> vector<8x256xf32>
    %126 = arith.addf %123, %125 : vector<8x256xf32>
    %127 = vector.extract_strided_slice %126 {offsets = [0, 0], sizes = [8, 64], strides = [1, 1]} : vector<8x256xf32> to vector<8x64xf32>
    %128 = arith.negf %127 : vector<8x64xf32>
    %129 = math.exp %128 : vector<8x64xf32>
    %cst_40 = arith.constant 1.000000e+00 : f32
    %130 = vector.broadcast %cst_40 : f32 to vector<8x64xf32>
    %131 = arith.addf %130, %129 : vector<8x64xf32>
    %132 = arith.divf %130, %131 : vector<8x64xf32>
    %133 = vector.extract_strided_slice %126 {offsets = [0, 64], sizes = [8, 64], strides = [1, 1]} : vector<8x256xf32> to vector<8x64xf32>
    %134 = arith.negf %133 : vector<8x64xf32>
    %135 = math.exp %134 : vector<8x64xf32>
    %cst_41 = arith.constant 1.000000e+00 : f32
    %136 = vector.broadcast %cst_41 : f32 to vector<8x64xf32>
    %137 = arith.addf %136, %135 : vector<8x64xf32>
    %138 = arith.divf %136, %137 : vector<8x64xf32>
    %139 = vector.extract_strided_slice %126 {offsets = [0, 128], sizes = [8, 64], strides = [1, 1]} : vector<8x256xf32> to vector<8x64xf32>
    %140 = math.tanh %139 : vector<8x64xf32>
    %141 = vector.extract_strided_slice %126 {offsets = [0, 192], sizes = [8, 64], strides = [1, 1]} : vector<8x256xf32> to vector<8x64xf32>
    %142 = arith.negf %141 : vector<8x64xf32>
    %143 = math.exp %142 : vector<8x64xf32>
    %cst_42 = arith.constant 1.000000e+00 : f32
    %144 = vector.broadcast %cst_42 : f32 to vector<8x64xf32>
    %145 = arith.addf %144, %143 : vector<8x64xf32>
    %146 = arith.divf %144, %145 : vector<8x64xf32>
    %147 = arith.mulf %138, %120 : vector<8x64xf32>
    %148 = arith.mulf %132, %140 : vector<8x64xf32>
    %149 = arith.addf %147, %148 : vector<8x64xf32>
    %150 = math.tanh %149 : vector<8x64xf32>
    %151 = arith.mulf %146, %150 : vector<8x64xf32>
    %152 = arith.addi %13, %c3_i32 : i32
    %c8_i32_43 = arith.constant 8 : i32
    %153 = arith.cmpi slt, %152, %c8_i32_43 : i32
    %154 = arith.select %153, %151, %119 : vector<8x64xf32>
    %155 = arith.select %153, %149, %120 : vector<8x64xf32>
    %c4_i32_44 = arith.constant 4 : i32
    %c0_45 = arith.constant 0 : index
    %c0_46 = arith.constant 0 : index
    %156 = vector.load %arg10[%c0_45, %c0_46] : memref<8x64xf32, #tpu.memory_space<vmem>>, vector<8x64xf32>
    tpu.vector_store %arg10[%c0_45, %c0_46], %154 {strides = array<i32>} : memref<8x64xf32, #tpu.memory_space<vmem>>, vector<8x64xf32>,
    %c0_47 = arith.constant 0 : index
    %c0_48 = arith.constant 0 : index
    %157 = vector.load %arg11[%c0_47, %c0_48] : memref<8x64xf32, #tpu.memory_space<vmem>>, vector<8x64xf32>
    tpu.vector_store %arg11[%c0_47, %c0_48], %155 {strides = array<i32>} : memref<8x64xf32, #tpu.memory_space<vmem>>, vector<8x64xf32>,
    %c1_i32_49 = arith.constant 1 : i32
    %158 = arith.cmpi eq, %arg1, %c1_i32_49 : i32
    %159 = arith.extui %158 : i1 to i32
    %c0_i32_50 = arith.constant 0 : i32
    %160 = arith.cmpi ne, %159, %c0_i32_50 : i32
    scf.if %160 {
      %c0_51 = arith.constant 0 : index
      %c0_52 = arith.constant 0 : index
      %161 = vector.load %arg10[%c0_51, %c0_52] : memref<8x64xf32, #tpu.memory_space<vmem>>, vector<8x64xf32>
      %c0_53 = arith.constant 0 : index
      %c0_54 = arith.constant 0 : index
      %162 = vector.load %arg6[%c0_53, %c0_54] : memref<64x64xf32, #tpu.memory_space<vmem>>, vector<64x64xf32>
      %cst_55 = arith.constant dense<0.000000e+00> : vector<8x64xf32>
      %163 = tpu.matmul %161, %162, %cst_55 {dimension_numbers = #tpu.dot_dimension_numbers<[1], [0], [0], [1], [0, 0, 1, 1], [], []>} : vector<8x64xf32>, vector<64x64xf32>, vector<8x64xf32> -> vector<8x64xf32>
      %c0_56 = arith.constant 0 : index
      %c0_57 = arith.constant 0 : index
      %164 = vector.load %arg7[%c0_56, %c0_57] : memref<1x64xf32, #tpu.memory_space<vmem>>, vector<1x64xf32>
      %165 = vector.broadcast %164 : vector<1x64xf32> to vector<8x64xf32>
      %166 = arith.addf %163, %165 : vector<8x64xf32>
      %167 = math.tanh %166 : vector<8x64xf32>
      %c0_58 = arith.constant 0 : index
      %c0_59 = arith.constant 0 : index
      %168 = vector.load %arg8[%c0_58, %c0_59] : memref<8x64xf32, #tpu.memory_space<vmem>>, vector<8x64xf32>
      tpu.vector_store %arg8[%c0_58, %c0_59], %167 {strides = array<i32>} : memref<8x64xf32, #tpu.memory_space<vmem>>, vector<8x64xf32>,
    } else {
    }
    return
  }
  func.func @transform_0(%arg0: i32, %arg1: i32) -> (i32, i32, i32) {
    %c0_i32 = arith.constant 0 : i32
    %c0_i32_0 = arith.constant 0 : i32
    return %arg1, %arg0, %c0_i32 : i32, i32, i32
  }
  func.func @transform_1(%arg0: i32, %arg1: i32) -> (i32, i32) {
    %c0_i32 = arith.constant 0 : i32
    %c0_i32_0 = arith.constant 0 : i32
    %c0_i32_1 = arith.constant 0 : i32
    return %c0_i32, %c0_i32_0 : i32, i32
  }
  func.func @transform_2(%arg0: i32, %arg1: i32) -> (i32, i32) {
    %c0_i32 = arith.constant 0 : i32
    %c0_i32_0 = arith.constant 0 : i32
    %c0_i32_1 = arith.constant 0 : i32
    return %c0_i32, %c0_i32_0 : i32, i32
  }
  func.func @transform_3(%arg0: i32, %arg1: i32) -> (i32, i32) {
    %c0_i32 = arith.constant 0 : i32
    %c0_i32_0 = arith.constant 0 : i32
    %c0_i32_1 = arith.constant 0 : i32
    return %c0_i32, %c0_i32_0 : i32, i32
  }
  func.func @transform_4(%arg0: i32, %arg1: i32) -> (i32, i32) {
    %c0_i32 = arith.constant 0 : i32
    %c0_i32_0 = arith.constant 0 : i32
    %c0_i32_1 = arith.constant 0 : i32
    return %c0_i32, %c0_i32_0 : i32, i32
  }
  func.func @transform_5(%arg0: i32, %arg1: i32) -> (i32, i32) {
    %c0_i32 = arith.constant 0 : i32
    %c0_i32_0 = arith.constant 0 : i32
    %c0_i32_1 = arith.constant 0 : i32
    return %c0_i32, %c0_i32_0 : i32, i32
  }
  func.func @transform_6(%arg0: i32, %arg1: i32) -> (i32, i32) {
    %c0_i32 = arith.constant 0 : i32
    %c0_i32_0 = arith.constant 0 : i32
    return %arg0, %c0_i32 : i32, i32
  }
}

</mosaic_0001>

<bundles_post_ra>
// kernel: tpu_custom_call.1
= control target key start
LH: loop header
LB: loop body
LE: loop exit
PB: predicated region body
PF: predicated region fallthrough
CT: control target
= control target key end

     0   :  { %s1990_s0 = inlined_call_operand.hbm [shape: bf16[8,8,128], index: 0, kind: input, shape index: {}]   ;;  %s1991_s1 = inlined_call_operand.hbm [shape: bf16[128,256], index: 1, kind: input, shape index: {}]   ;;  %s1992_s2 = inlined_call_operand.hbm [shape: f32[1,256], index: 2, kind: input, shape index: {}]   ;;  %s1993_s3 = inlined_call_operand.hbm [shape: bf16[64,256], index: 3, kind: input, shape index: {}]   ;;  %s1994_s4 = inlined_call_operand.hbm [shape: f32[64,64], index: 4, kind: input, shape index: {}]   ;;  %s1995_s5 = inlined_call_operand.vmem [shape: f32[1,64], index: 5, kind: input, shape index: {}]   ;;  %s1996_s6 = inlined_call_operand.hbm [shape: f32[8,64], index: 6, kind: output, shape index: {}]  }
   0x1   :  { %1998 = sst [smem:[#allocation19_spill]] %s1991_s1 }
   0x2   :  { %11 = vsyncpa [#allocation6], 0 }
   0x3   :  { %13 = vsyncpa [#allocation6 + $0x1], 0 }
   0x4   :  { %14 = vsyncpa [#allocation9], 0 }
   0x5   :  { %15 = vsyncpa [#allocation12], 0 }
   0x6   :  { %16 = vsyncpa [#allocation7], 0  ;;  %s1727_s21 = smov 0   ;;  %s1729_s22 = smov 0  }
   0x7   :  { %s1731_s23 = smov 0   ;;  %s1733_s24 = smov 0  }
   0x8   :  { %s1735_s25 = smov 0   ;;  %s1737_s26 = smov 0  }
   0x9 LB: > { %s1997_s27 = sadd.s32 4294967295, %s1679_s26   ;;  %p56_p0 = scmp.ne.s32.totalorder %s1663_s22, %s1659_s21  ;;  %s1679_s26 = sphi %s1737_s26, %s22_s26   ;;  %s1675_s25 = sphi %s1735_s25, %s2010_s25   ;;  %s1671_s24 = sphi %s1733_s24, %s2009_s24   ;;  %s1667_s23 = sphi %s1731_s23, %s2008_s23   ;;  %s1663_s22 = sphi %s1729_s22, %s2007_s22   ;;  %s1659_s21 = sphi %s1727_s21, %s2006_s21  }
   0xa   : > { %p1759_p1 = scmp.eq.s32.totalorder %s1997_s27, 0  ;;  %p1109_p2 = scmp.ge.s32.totalorder %s1679_s26, 1 }
   0xb   : > { %p198_p3 = scmp.lt.s32.totalorder %s1679_s26, 3  ;;  %s2001_s1 = sld [smem:[#allocation19_spill]] }
   0xc   : > { %p1767_p4 = por %p1759_p1, %p56_p0  ;;  %s1681_s10 = smov [#allocation8]  }
   0xd   : > { %p1774_p5 = pnand %p1109_p2, %p198_p3  ;;  %s211_s11 = sshll.u32 %s1681_s10, 4  ;;  %s212_s11 = int_to_ptr.vmem [resolvable:$true] %s211_s11 }
   0xe   : > { %s235_s15 = sshll.u32 %s1993_s3, 4  ;;  %s1682_s16 = smov 128   ;;  %s236_s15 = int_to_ptr.hbm [resolvable:$true] %s235_s15 }
   0xf   : > { %p1301_p6 = pneg %p1774_p5  ;;  %s1683_s17 = smov 8  }
  0x10   : > { %s1684_s18 = smov [#allocation11]   ;;  %s224_s30 = sshll.u32 %s1992_s2, 4  ;;  %s225_s30 = int_to_ptr.hbm [resolvable:$true] %s224_s30 }
  0x11   : > { %s209_s8 = sshll.u32 %s2001_s1, 4  ;;  %p1782_p7 = pnand %p1301_p6, %p1759_p1  ;;  %s210_s8 = int_to_ptr.hbm [resolvable:$true] %s209_s8 }
  0x12   : > { %s237_s19 = sshll.u32 %s1684_s18, 4  ;;  %s1686_s14 = smov [#allocation13]   ;;  %s238_s19 = int_to_ptr.vmem [resolvable:$true] %s237_s19 }
  0x13   : > { %1304 = dma.hbm_to_vmem [thread:$0]  (!%p1782_p7), %s210_s8, 2048, %s212_s11, [#allocation9], %s1682_s16, %s1682_s16, %s1683_s17  }
  0x14   : > { %1310 = dma.hbm_to_vmem [thread:$0]  (!%p1782_p7), %s236_s15, 1024, %s238_s19, [#allocation12], %s1682_s16, %s1682_s16, %s1683_s17  }
  0x15   : > { %s249_s8 = sshll.u32 %s1994_s4, 4  ;;  %s1685_s11 = smov [#allocation10]   ;;  %s250_s8 = int_to_ptr.hbm [resolvable:$true] %s249_s8 }
  0x16   : > { %s226_s13 = sshll.u32 %s1685_s11, 4  ;;  %s251_s18 = sshll.u32 %s1686_s14, 4  ;;  %s227_s13 = int_to_ptr.vmem [resolvable:$true] %s226_s13  ;;  %s252_s18 = int_to_ptr.vmem [resolvable:$true] %s251_s18 }
  0x17   : > { %1307 = dma.hbm_to_vmem [thread:$0]  (!%p1782_p7), %s225_s30, 32, %s227_s13, [#allocation9]  }
  0x18   : > { %1313 = dma.hbm_to_vmem [thread:$0]  (!%p1782_p7), %s250_s8, 1024, %s252_s18, [#allocation12], %s1682_s16, %s1682_s16, %s1683_s17  }
  0x19   : > { %s31_s15 = sadd.s32 1, %s1675_s25  ;;  %s43_s19 = sadd.s32 1, %s1667_s23 }
  0x1a   : > { %p32_p8 = scmp.ge.s32.totalorder %s31_s15, 2  ;;  %p50_p9 = scmp.ne.s32.totalorder %s1667_s23, %s1663_s22 }
  0x1b   : > { %p51_p10 = scmp.eq.s32.totalorder %s1679_s26, 0  ;;  %p1322_p11 = scmp.lt.s32.totalorder %s1679_s26, 2 }
  0x1c   : > { %s2012_s15 = smov (%p32_p8, %s31_s15), 0  ;;  %s268_s21 = sand.u32 1, %s1667_s23  }
  0x1d   : > { %p1811_p12 = por %p51_p10, %p50_p9  ;;  %s38_s30 = ssub.s32 %s1675_s25, %s2012_s15 }
  0x1e   : > { %p41_p13 = scmp.eq.s32.totalorder %s38_s30, 0  ;;  %s1115_s12 = sshll.u32 %s268_s21, 4 }
  0x1f   : > { %s1252_s16 = sshll.u32 %s1675_s25, 4  ;;  %s272_s11 = scalar_lea.vmem [#allocation5], %s1115_s12 }
  0x20   : > { %s1820_s17 = scalar_select %p41_p13, %s1667_s23, %s43_s19  }
  0x21   : > { %s278_s8 = scalar_lea.hbm %s1990_s0, %s1252_s16  ;;  %s281_s13 = sshll.u32 %s272_s11, 4  ;;  %s282_s13 = int_to_ptr.vmem [resolvable:$true] %s281_s13 }
  0x22   : > { %s279_s14 = sshll.u32 %s278_s8, 4  ;;  %p1315_p0 = pnand %p1322_p11, %p1811_p12  ;;  %s280_s14 = int_to_ptr.hbm [resolvable:$true] %s279_s14 }
  0x23   : > { %s269_s18 = scalar_lea.sflag [#allocation6], %s268_s21  ;;  %s1687_s27 = smov 64  }
  0x24   : > { %s1688_s1 = smov 4   ;;  %293 = sbr.rel (%p1774_p5) target bundleno = 1797 (0x705), region = 44 }
  0x25   : > { %1317 = dma.hbm_to_vmem [thread:$0]  (!%p1315_p0), %s280_s14, 256, %s282_s13, %s269_s18, %s1687_s27, %s1687_s27, %s1688_s1  }
  0x26   : > { %s295_s19 = sand.u32 (!%p1774_p5), 1, %s1663_s22  }
  0x27   : > { %s1832_s30 = sshll.u32 (!%p1774_p5), %s295_s19, 4  ;;  %s296_s12 = scalar_lea.sflag (!%p1774_p5), [#allocation6], %s295_s19 }
  0x28   : > { %s299_s16 = scalar_lea.vmem (!%p1774_p5), [#allocation5], %s1832_s30 }
  0x29   : > { %1642 = dma.done.wait (%p1767_p4), %s296_s12, 256  }
  0x2a   : > { %1644 = vsyncadd (%p1767_p4), %s296_s12, 4294967040 }
  0x2b   : > { %1646 = dma.done.wait (%p1759_p1), [#allocation9], 2080  }
  0x2c   : > { %1648 = vsyncadd (%p1759_p1), [#allocation9], 4294965216 }
  0x2d   : > { %1650 = dma.done.wait (%p1759_p1), [#allocation12], 2048  }
  0x2e   : > { %1652 = vsyncadd (%p1759_p1), [#allocation12], 4294965248  ;;  %p1124_p2 = scmp.ne.s32.totalorder %s1671_s24, 0 }
  0x30   : > { %349 = sbr.rel (%p1124_p2) target bundleno = 56 (0x38), region = 68 }
  0x35   : > { %vm350_vm0 = vcmask 523264   ;;  %v1689_v0 = vmov 0.0  }
  0x36   : > { %351 = vst.msk [vmem:[#allocation3] sm:$0xff] %vm350_vm0, %v1689_v0 }
  0x37   : > { %352 = vst.msk [vmem:[#allocation4] sm:$0xff] %vm350_vm0, %v1689_v0 }
  0x38 PF: > { %v1191_v1 = vld [vmem:[#allocation8 + $0x70] sm:$0xf]  ;;  %v1270_v2 = vld [vmem:[#allocation8 + $0x74] sm:$0xf0]  ;;  %v1183_v3 = vld [vmem:[#allocation8 + $0x60] sm:$0xf] }
  0x39   : > { %v1192_v4 = vor.u32 %v1270_v2, %v1191_v1  ;;  %v1268_v5 = vld [vmem:[#allocation8 + $0x64] sm:$0xf0]  ;;  %v1224_v6 = vld [vmem:[#allocation11 + $0x30] sm:$0xf]  ;;  %v1278_v7 = vld [vmem:[#allocation11 + $0x34] sm:$0xf0] }
  0x3a   : > { %v1848_v8 = vor.u32 %v1278_v7, %v1224_v6  ;;  %v1269_v9 = vld [vmem:[#allocation8 + $0x74] sm:$0xf]  ;;  %v1184_v10 = vor.u32 %v1268_v5, %v1183_v3  ;;  %v1193_v11 = vld [vmem:[#allocation8 + $0x78] sm:$0xf0]  ;;  %v1216_v12 = vld [vmem:[#allocation11 + $0x20] sm:$0xf] }
  0x3b   : > { %471 = vmatpush.bf16.msra.mxu0 %v1192_v4  ;;  %v1276_v13 = vld [vmem:[#allocation11 + $0x24] sm:$0xf0]  ;;  %v1175_v14 = vld [vmem:[#allocation8 + $0x50] sm:$0xf]  ;;  %v1266_v15 = vld [vmem:[#allocation8 + $0x54] sm:$0xf0]  ;;  %v1196_v16 = vor.u32 %v1269_v9, %v1193_v11 }
  0x3c   : > { %579 = vmatpush.bf16.msra.mxu2 %v1848_v8  ;;  %v1851_v17 = vor.u32 %v1276_v13, %v1216_v12  ;;  %v1267_v18 = vld [vmem:[#allocation8 + $0x64] sm:$0xf]  ;;  %v1185_v19 = vld [vmem:[#allocation8 + $0x68] sm:$0xf0]  ;;  %v1208_v20 = vld [vmem:[#allocation11 + $0x10] sm:$0xf]  ;;  %v1176_v23 = vor.u32 %v1266_v15, %v1175_v14 }
  0x3d   : > { %v1274_v21 = vld [vmem:[#allocation11 + $0x14] sm:$0xf0]  ;;  %490 = vmatpush.bf16.msra.mxu1 %v1196_v16  ;;  %v1188_v22 = vor.u32 %v1267_v18, %v1185_v19  ;;  %v1265_v24 = vld [vmem:[#allocation8 + $0x54] sm:$0xf]  ;;  %v1167_v26 = vld [vmem:[#allocation8 + $0x40] sm:$0xf] }
  0x3e   : > { %v1177_v25 = vld [vmem:[#allocation8 + $0x58] sm:$0xf0]  ;;  %v1264_v27 = vld [vmem:[#allocation8 + $0x44] sm:$0xf0]  ;;  %v1854_v28 = vor.u32 %v1274_v21, %v1208_v20  ;;  %v1200_v29 = vld [vmem:[#allocation11] sm:$0xf] }
  0x3f   : > { %472 = vmatpush.bf16.msra.mxu0 %v1184_v10  ;;  %v1272_v30 = vld [vmem:[#allocation11 + $0x4] sm:$0xf0]  ;;  %v1277_v31 = vld [vmem:[#allocation11 + $0x34] sm:$0xf]  ;;  %v1159_v32 = vld [vmem:[#allocation8 + $0x30] sm:$0xf]  ;;  %v1180_v33 = vor.u32 %v1265_v24, %v1177_v25  ;;  %v1168_v35 = vor.u32 %v1264_v27, %v1167_v26 }
  0x40   : > { %580 = vmatpush.bf16.msra.mxu2 %v1851_v17  ;;  %v1226_v34 = vld [vmem:[#allocation11 + $0x38] sm:$0xf0]  ;;  %v1263_v36 = vld [vmem:[#allocation8 + $0x44] sm:$0xf]  ;;  %v1169_v37 = vld [vmem:[#allocation8 + $0x48] sm:$0xf0]  ;;  %v1859_v41 = vor.u32 %v1272_v30, %v1200_v29 }
  0x41   : > { %491 = vmatpush.bf16.msra.mxu1 %v1188_v22  ;;  %v1856_v38 = vor.u32 %v1277_v31, %v1226_v34  ;;  %v1275_v39 = vld [vmem:[#allocation11 + $0x24] sm:$0xf]  ;;  %v1262_v40 = vld [vmem:[#allocation8 + $0x34] sm:$0xf0]  ;;  %v526_v42 = vld [vmem:[#allocation3] sm:$0xff]  ;;  %v1172_v45 = vor.u32 %v1263_v36, %v1169_v37  ;;  %s1690_s1 = smov 64  }
  0x42   : > { %v1218_v43 = vld [vmem:[#allocation11 + $0x28] sm:$0xf0]  ;;  %v1273_v46 = vld [vmem:[#allocation11 + $0x14] sm:$0xf]  ;;  %v1210_v47 = vld [vmem:[#allocation11 + $0x18] sm:$0xf0]  ;;  %v1160_v48 = vor.u32 %v1262_v40, %v1159_v32  ;;  %v530_v49 = vpack.c.bf16 %v526_v42, %v526_v42  ;;  %660 = vrot.lane.b32.xlu1 %v526_v42, %s1690_s1 }
  0x43   : > { %473 = vmatpush.bf16.msra.mxu0 %v1176_v23  ;;  %592 = vmatpush.bf16.msra.mxu3 %v1856_v38  ;;  %v1862_v44 = vor.u32 %v1275_v39, %v1218_v43  ;;  %v1261_v50 = vld [vmem:[#allocation8 + $0x34] sm:$0xf]  ;;  %v1161_v51 = vld [vmem:[#allocation8 + $0x38] sm:$0xf0]  ;;  %vm571_vm1 = vcmask 523264   ;;  %v1213_v55 = vor.u32 %v1273_v46, %v1210_v47  ;;  %s1898_s27 = sshll.u32 %s1671_s24, 2 }
  0x44   : > { %581 = vmatpush.bf16.msra.mxu2 %v1854_v28  ;;  %v1151_v52 = vld [vmem:[#allocation8 + $0x20] sm:$0xf]  ;;  %v1260_v53 = vld [vmem:[#allocation8 + $0x24] sm:$0xf0]  ;;  %v527_v54 = vld [vmem:[#allocation4] sm:$0xff]  ;;  %v1164_v56 = vor.u32 %v1261_v50, %v1161_v51  ;;  %p655_p1 = scmp.lt.s32.totalorder %s1898_s27, 8 }
  0x45   : > { %492 = vmatpush.bf16.msra.mxu1 %v1180_v33  ;;  %643 = vrot.lane.b32.xlu0 %v527_v54, %s1690_s1  ;;  %v1271_v57 = vld [vmem:[#allocation11 + $0x4] sm:$0xf]  ;;  %v1202_v58 = vld [vmem:[#allocation11 + $0x8] sm:$0xf0]  ;;  %v1152_v59 = vor.u32 %v1260_v53, %v1151_v52  ;;  %v1258_v63 = vld [vmem:[#allocation8 + $0x14] sm:$0xf0] }
  0x46   : > { %v1259_v60 = vld [vmem:[#allocation8 + $0x24] sm:$0xf]  ;;  %v1153_v61 = vld [vmem:[#allocation8 + $0x28] sm:$0xf0]  ;;  %v1143_v62 = vld [vmem:[#allocation8 + $0x10] sm:$0xf]  ;;  %v1205_v0 = vor.u32 %v1271_v57, %v1202_v58 }
  0x47   : > { %474 = vmatpush.bf16.msra.mxu0 %v1168_v35  ;;  %593 = vmatpush.bf16.msra.mxu3 %v1862_v44  ;;  %v1156_v1 = vor.u32 %v1259_v60, %v1153_v61  ;;  %v1144_v2 = vor.u32 %v1258_v63, %v1143_v62  ;;  %v1257_v3 = vld [vmem:[#allocation8 + $0x14] sm:$0xf]  ;;  %v1145_v4 = vld [vmem:[#allocation8 + $0x18] sm:$0xf0]  ;;  %v1135_v5 = vld [vmem:[#allocation8] sm:$0xf] }
  0x48   : > { %582 = vmatpush.bf16.msra.mxu2 %v1859_v41  ;;  %v1256_v6 = vld [vmem:[#allocation8 + $0x4] sm:$0xf0]  ;;  %v1148_v7 = vor.u32 %v1257_v3, %v1145_v4  ;;  %v1255_v10 = vld [vmem:[#allocation8 + $0x4] sm:$0xf]  ;;  %v1137_v11 = vld [vmem:[#allocation8 + $0x8] sm:$0xf0] }
  0x49   : > { %493 = vmatpush.bf16.msra.mxu1 %v1172_v45  ;;  %v1136_v9 = vor.u32 %v1256_v6, %v1135_v5  ;;  %v1253_v12 = vld [vmem:[%s299_s16] sm:$0xff]  ;;  %v1140_v13 = vor.u32 %v1255_v10, %v1137_v11  ;;  %s656_s28 = scalar_select %p655_p1, 1, 0 }
  0x4a   : > { %v373_v14 = vld [vmem:[#allocation10] sm:$0x3]  ;;  %s751_s29 = sadd.s32 1, %s1898_s27  ;;  %s844_s20 = sadd.s32 2, %s1898_s27 }
  0x4b   : > { %475 = vmatpush.bf16.msra.mxu0 %v1160_v48  ;;  %1230 = vmatmul.msk.bf16.vlgmr.msra.gmra.mxu2 %vm571_vm1, %v530_v49  ;;  %v1890_v15 = vperm.slane %v373_v14, 0  ;;  %v1893_v25 = vperm.slane %v373_v14, 1  ;;  %v657_v48 = vstv %s656_s28  ;;  %p752_p3 = scmp.lt.s32.totalorder %s751_s29, 8  ;;  %p845_p4 = scmp.lt.s32.totalorder %s844_s20, 8 }
  0x4c   : > { %679 = vmatpush.bf16.msrb.mxu2 %v1848_v8  ;;  %594 = vmatpush.bf16.msra.mxu3 %v1213_v55  ;;  %vm658_vm8 = vcmp.eq.s32.totalorder %v657_v48, 1  ;;  %s937_s7 = sadd.s32 3, %s1898_s27  ;;  %p1246_p6 = scmp.ne.s32.totalorder %s1671_s24, 1 }
  0x4d   : > { %494 = vmatpush.bf16.msra.mxu1 %v1164_v56  ;;  %s753_s9 = scalar_select %p752_p3, 1, 0 }
  0x4e   : > { %s846_s21 = scalar_select %p845_p4, 1, 0 }
  0x4f   : > { %476 = vmatpush.bf16.msra.mxu0 %v1152_v59  ;;  %p938_p5 = scmp.lt.s32.totalorder %s937_s7, 8 }
  0x50   : > { %680 = vmatpush.bf16.msrb.mxu2 %v1851_v17  ;;  %595 = vmatpush.bf16.msra.mxu3 %v1205_v0 }
  0x51   : > { %495 = vmatpush.bf16.msra.mxu1 %v1156_v1  ;;  %s939_s10 = scalar_select %p938_p5, 1, 0 }
  0x53   : > { %477 = vmatpush.bf16.msra.mxu0 %v1144_v2  ;;  %1231 = vmatmul.msk.bf16.vlgmr.msra.gmra.mxu3 %vm571_vm1, %v530_v49 }
  0x54   : > { %692 = vmatpush.bf16.msrb.mxu3 %v1856_v38  ;;  %681 = vmatpush.bf16.msrb.mxu2 %v1854_v28 }
  0x55   : > { %496 = vmatpush.bf16.msra.mxu1 %v1148_v7 }
  0x57   : > { %478 = vmatpush.bf16.msra.mxu0 %v1136_v9 }
  0x58   : > { %693 = vmatpush.bf16.msrb.mxu3 %v1862_v44  ;;  %682 = vmatpush.bf16.msrb.mxu2 %v1859_v41 }
  0x59   : > { %497 = vmatpush.bf16.msra.mxu1 %v1140_v13 }
  0x5a   : > { %479 = vmatmul.bf16.vlgmr.msra.gmra.mxu0 %v1253_v12 }
  0x5b   : > { %865 = vmatpush.bf16.msrb.mxu0 %v1848_v8 }
  0x5c   : > { %772 = vmatpush.bf16.msra.mxu2 %v1848_v8  ;;  %694 = vmatpush.bf16.msrb.mxu3 %v1213_v55 }
  0x5d   : > { %878 = vmatpush.bf16.msrb.mxu1 %v1856_v38 }
  0x5e   : > { %498 = vmatmul.bf16.vlgmr.msra.gmra.mxu1 %v1253_v12 }
  0x5f   : > { %866 = vmatpush.bf16.msrb.mxu0 %v1851_v17 }
  0x60   : > { %773 = vmatpush.bf16.msra.mxu2 %v1851_v17  ;;  %695 = vmatpush.bf16.msrb.mxu3 %v1205_v0 }
  0x61   : > { %879 = vmatpush.bf16.msrb.mxu1 %v1862_v44 }
  0x63   : > { %867 = vmatpush.bf16.msrb.mxu0 %v1854_v28 }
  0x64   : > { %785 = vmatpush.bf16.msra.mxu3 %v1856_v38  ;;  %774 = vmatpush.bf16.msra.mxu2 %v1854_v28 }
  0x65   : > { %880 = vmatpush.bf16.msrb.mxu1 %v1213_v55 }
  0x67   : > { %868 = vmatpush.bf16.msrb.mxu0 %v1859_v41 }
  0x68   : > { %786 = vmatpush.bf16.msra.mxu3 %v1862_v44  ;;  %775 = vmatpush.bf16.msra.mxu2 %v1859_v41 }
  0x69   : > { %881 = vmatpush.bf16.msrb.mxu1 %v1205_v0 }
  0x6c   : > { %787 = vmatpush.bf16.msra.mxu3 %v1213_v55 }
  0x70   : > { %788 = vmatpush.bf16.msra.mxu3 %v1205_v0 }
  0xb4   : > { %v661_v60 = vpop.permute.xlu1 %660 }
  0xb7   : > { %v644_v46 = vpop.permute.xlu0 %643 }
  0xce   : > { %v584_v8 = vpop.f32.mrf.mxu2 }
  0xd6   : > { %v586_v16 = vpop.f32.mrf.mxu2  ;;  %v597_v18 = vpop.f32.mrf.mxu3 }
  0xd7   : > { %v480_v17 = vpop.f32.mrf.mxu0 }
  0xd8   : > { %v481_v19 = vadd.f32 %v480_v17, %v1890_v15 }
  0xda   : > { %v601_v20 = vadd.f32 %v584_v8, %v481_v19 }
  0xdb   : > { %v499_v26 = vpop.f32.mrf.mxu1 }
  0xdc   : > { %v1232_v21 = vmul.f32 -1.442695, %v601_v20  ;;  %v500_v27 = vadd.f32 %v499_v26, %v1893_v25 }
  0xde   : > { %1388 = vpow2.f32 %v1232_v21  ;;  %v599_v22 = vpop.f32.mrf.mxu3  ;;  %v602_v29 = vadd.f32 %v597_v18, %v500_v27 }
  0xdf   : > { %v482_v2 = vpop.f32.mrf.mxu0 }
  0xe0   : > { %v1233_v41 = vmul.f32 -1.442695, %v602_v29  ;;  %v483_v3 = vadd.f32 %v482_v2, %v1890_v15 }
  0xe3   : > { %v501_v13 = vpop.f32.mrf.mxu1 }
  0xe4   : > { %v1389_v23 = vpop.eup %1388  ;;  %v502_v8 = vadd.f32 %v501_v13, %v1893_v25 }
  0xe5   : > { %v606_v24 = vadd.f32 1.0, %v1389_v23 }
  0xe7   : > { %1390 = vrcp.f32 %v606_v24  ;;  %v618_v32 = vand.u32 2147483648, %v606_v24  ;;  %v616_v34 = vand.u32 2147483647, %v606_v24  ;;  %vm612_vm3 = vweird.f32 %v606_v24 }
  0xe8   : > { %1392 = vtanh.f32 %v602_v29 }
  0xe9   : > { %v619_v37 = vor.u32 1.1754944e-38, %v618_v32  ;;  %vm617_vm5 = vcmp.eq.f32.partialorder %v616_v34, 8.507059e+37  ;;  %1394 = vpow2.f32 %v1233_v41  ;;  %v1254_v32 = vld [vmem:[%s299_s16 + $0x8] sm:$0xff] }
  0xea   : > { %484 = vmatmul.bf16.gmra.mxu0 %v1254_v32  ;;  %503 = vmatmul.bf16.gmra.mxu1 %v1254_v32 }
  0xed   : > { %v1391_v28 = vpop.eup %1390 }
  0xee   : > { %v608_v30 = vmul.f32 %v1391_v28, %v606_v24  ;;  %vm613_vm2 = vweird.f32 %v1391_v28  ;;  %v1393_v36 = vpop.eup %1392 }
  0xef   : > { %vm614_vm4 = vmor %vm612_vm3, %vm613_vm2  ;;  %v1395_v42 = vpop.eup %1394 }
  0xf0   : > { %v609_v31 = vsub.f32 1.0, %v608_v30  ;;  %v626_v43 = vadd.f32 1.0, %v1395_v42 }
  0xf2   : > { %v610_v33 = vmul.f32 %v1391_v28, %v609_v31  ;;  %1396 = vrcp.f32 %v626_v43  ;;  %vm632_vm6 = vweird.f32 %v626_v43  ;;  %v638_v53 = vand.u32 2147483648, %v626_v43 }
  0xf3   : > { %v636_v55 = vand.u32 2147483647, %v626_v43 }
  0xf4   : > { %v611_v35 = vadd.f32 %v1391_v28, %v610_v33  ;;  %v639_v57 = vor.u32 1.1754944e-38, %v638_v53 }
  0xf5   : > { %vm637_vm10 = vcmp.eq.f32.partialorder %v636_v55, 8.507059e+37 }
  0xf6   : > { %v615_v38 = vsel %vm614_vm4, %v1391_v28, %v611_v35 }
  0xf7   : > { %v620_v39 = vsel %vm617_vm5, %v619_v37, %v615_v38 }
  0xf8   : > { %v647_v40 = vmul.f32 %v1393_v36, %v620_v39  ;;  %v1397_v44 = vpop.eup %1396  ;;  %v646_v50 = vmul.f32 %v644_v46, %v620_v39  ;;  %v754_v36 = vstv %s753_s9 }
  0xf9   : > { %v628_v45 = vmul.f32 %v1397_v44, %v626_v43  ;;  %vm633_vm7 = vweird.f32 %v1397_v44  ;;  %vm755_vm15 = vcmp.eq.s32.totalorder %v754_v36, 1 }
  0xfa   : > { %649 = vrot.lane.b32.xlu0 %v647_v40, %s1690_s1  ;;  %vm634_vm9 = vmor %vm632_vm6, %vm633_vm7 }
  0xfb   : > { %v629_v47 = vsub.f32 1.0, %v628_v45 }
  0xfd   : > { %v630_v49 = vmul.f32 %v1397_v44, %v629_v47 }
  0xff   : > { %v631_v54 = vadd.f32 %v1397_v44, %v630_v49 }
 0x101   : > { %v635_v58 = vsel %vm634_vm9, %v1397_v44, %v631_v54 }
 0x102   : > { %v640_v61 = vsel %vm637_vm10, %v639_v57, %v635_v58 }
 0x167   : > { %v485_v53 = vpop.f32.mrf.mxu0 }
 0x168   : > { %v486_v54 = vadd.f32 %v485_v53, %v1890_v15 }
 0x16c   : > { %v650_v51 = vpop.permute.xlu0 %649 }
 0x16d   : > { %v652_v52 = vadd.f32 %v650_v51, %v646_v50 }
 0x16f   : > { %1398 = vtanh.f32 %v652_v52  ;;  %v1901_v56 = vsel %vm658_vm8, %v652_v52, %v644_v46 }
 0x175   : > { %v1399_v59 = vpop.eup %1398 }
 0x176   : > { %v654_v62 = vmul.f32 %v1399_v59, %v640_v61 }
 0x178   : > { %v1903_v63 = vsel %vm658_vm8, %v654_v62, %v661_v60 }
 0x179   : > { %v668_v0 = vpack.c.bf16 %v1903_v63, %v1903_v63 }
 0x17b   : > { %670 = vrot.lane.b32.xlu1 %v668_v0, %s1690_s1 }
 0x1ed   : > { %v671_v1 = vpop.permute.xlu1 %670 }
 0x1ee   : > { %1234 = vmatmul.msk.bf16.vlgmr.msrb.gmra.mxu2 %vm571_vm1, %v671_v1  ;;  %1235 = vmatmul.msk.bf16.vlgmr.msrb.gmra.mxu3 %vm571_vm1, %v671_v1 }
 0x271   : > { %v684_v4 = vpop.f32.mrf.mxu2  ;;  %v697_v5 = vpop.f32.mrf.mxu3 }
 0x272   : > { %v701_v6 = vadd.f32 %v684_v4, %v483_v3  ;;  %v702_v16 = vadd.f32 %v697_v5, %v502_v8 }
 0x274   : > { %v1236_v7 = vmul.f32 -1.442695, %v701_v6  ;;  %v1237_v29 = vmul.f32 -1.442695, %v702_v16 }
 0x276   : > { %1400 = vpow2.f32 %v1236_v7 }
 0x279   : > { %v686_v9 = vpop.f32.mrf.mxu2  ;;  %v699_v10 = vpop.f32.mrf.mxu3 }
 0x27c   : > { %v1401_v11 = vpop.eup %1400 }
 0x27d   : > { %v706_v12 = vadd.f32 1.0, %v1401_v11 }
 0x27f   : > { %1402 = vrcp.f32 %v706_v12  ;;  %v718_v19 = vand.u32 2147483648, %v706_v12  ;;  %v716_v21 = vand.u32 2147483647, %v706_v12  ;;  %vm712_vm12 = vweird.f32 %v706_v12 }
 0x280   : > { %1404 = vtanh.f32 %v702_v16 }
 0x281   : > { %v719_v23 = vor.u32 1.1754944e-38, %v718_v19  ;;  %vm717_vm14 = vcmp.eq.f32.partialorder %v716_v21, 8.507059e+37  ;;  %1406 = vpow2.f32 %v1237_v29  ;;  %v847_v21 = vstv %s846_s21 }
 0x282   : > { %vm848_vm9 = vcmp.eq.s32.totalorder %v847_v21, 1 }
 0x285   : > { %v1403_v14 = vpop.eup %1402 }
 0x286   : > { %v708_v17 = vmul.f32 %v1403_v14, %v706_v12  ;;  %vm713_vm11 = vweird.f32 %v1403_v14  ;;  %v1405_v26 = vpop.eup %1404 }
 0x287   : > { %vm714_vm13 = vmor %vm712_vm12, %vm713_vm11  ;;  %v1407_v30 = vpop.eup %1406 }
 0x288   : > { %v709_v18 = vsub.f32 1.0, %v708_v17  ;;  %v726_v31 = vadd.f32 1.0, %v1407_v30 }
 0x28a   : > { %v710_v20 = vmul.f32 %v1403_v14, %v709_v18  ;;  %1408 = vrcp.f32 %v726_v31  ;;  %v738_v42 = vand.u32 2147483648, %v726_v31  ;;  %vm732_vm2 = vweird.f32 %v726_v31 }
 0x28b   : > { %v736_v44 = vand.u32 2147483647, %v726_v31 }
 0x28c   : > { %v711_v22 = vadd.f32 %v1403_v14, %v710_v20  ;;  %v739_v46 = vor.u32 1.1754944e-38, %v738_v42 }
 0x28d   : > { %vm737_vm4 = vcmp.eq.f32.partialorder %v736_v44, 8.507059e+37 }
 0x28e   : > { %v715_v24 = vsel %vm714_vm13, %v1403_v14, %v711_v22 }
 0x28f   : > { %v720_v27 = vsel %vm717_vm14, %v719_v23, %v715_v24 }
 0x290   : > { %v743_v28 = vmul.f32 %v1405_v26, %v720_v27  ;;  %v1409_v33 = vpop.eup %1408  ;;  %v742_v38 = vmul.f32 %v720_v27, %v1901_v56 }
 0x291   : > { %v728_v34 = vmul.f32 %v1409_v33, %v726_v31  ;;  %vm733_vm0 = vweird.f32 %v1409_v33 }
 0x292   : > { %745 = vrot.lane.b32.xlu2 %v743_v28, %s1690_s1  ;;  %vm734_vm3 = vmor %vm732_vm2, %vm733_vm0 }
 0x293   : > { %v729_v35 = vsub.f32 1.0, %v728_v34 }
 0x295   : > { %v730_v37 = vmul.f32 %v1409_v33, %v729_v35 }
 0x297   : > { %v731_v41 = vadd.f32 %v1409_v33, %v730_v37 }
 0x299   : > { %v735_v45 = vsel %vm734_vm3, %v1409_v33, %v731_v41 }
 0x29a   : > { %v740_v48 = vsel %vm737_vm4, %v739_v46, %v735_v45 }
 0x2ec   : > { %v746_v39 = vpop.permute.xlu2 %745 }
 0x2ed   : > { %v748_v40 = vadd.f32 %v746_v39, %v742_v38  ;;  %v487_v39 = vpop.f32.mrf.mxu0 }
 0x2ee   : > { %v488_v41 = vadd.f32 %v487_v39, %v1890_v15 }
 0x2ef   : > { %1410 = vtanh.f32 %v748_v40  ;;  %v1919_v43 = vsel %vm755_vm15, %v748_v40, %v1901_v56 }
 0x2f5   : > { %v1411_v47 = vpop.eup %1410 }
 0x2f6   : > { %v750_v49 = vmul.f32 %v1411_v47, %v740_v48 }
 0x2f8   : > { %v1923_v50 = vsel %vm755_vm15, %v750_v49, %v1903_v63  ;;  %v504_v63 = vpop.f32.mrf.mxu1 }
 0x2f9   : > { %v761_v51 = vpack.c.bf16 %v1923_v50, %v1923_v50  ;;  %v505_v0 = vadd.f32 %v504_v63, %v1893_v25 }
 0x2fb   : > { %763 = vrot.lane.b32.xlu2 %v761_v51, %s1690_s1 }
 0x300   : > { %v506_v40 = vpop.f32.mrf.mxu1 }
 0x355   : > { %v764_v52 = vpop.permute.xlu2 %763 }
 0x356   : > { %1238 = vmatmul.msk.bf16.vlgmr.msra.gmra.mxu2 %vm571_vm1, %v764_v52  ;;  %1239 = vmatmul.msk.bf16.vlgmr.msra.gmra.mxu3 %vm571_vm1, %v764_v52 }
 0x3d9   : > { %v777_v55 = vpop.f32.mrf.mxu2  ;;  %v790_v56 = vpop.f32.mrf.mxu3 }
 0x3da   : > { %v794_v57 = vadd.f32 %v777_v55, %v486_v54  ;;  %v795_v2 = vadd.f32 %v790_v56, %v505_v0 }
 0x3dc   : > { %v1240_v58 = vmul.f32 -1.442695, %v794_v57  ;;  %v1241_v14 = vmul.f32 -1.442695, %v795_v2 }
 0x3de   : > { %1412 = vpow2.f32 %v1240_v58 }
 0x3e1   : > { %v779_v59 = vpop.f32.mrf.mxu2  ;;  %v792_v60 = vpop.f32.mrf.mxu3 }
 0x3e4   : > { %v1413_v61 = vpop.eup %1412 }
 0x3e5   : > { %v799_v62 = vadd.f32 1.0, %v1413_v61 }
 0x3e7   : > { %1414 = vrcp.f32 %v799_v62  ;;  %v811_v5 = vand.u32 2147483648, %v799_v62  ;;  %v809_v7 = vand.u32 2147483647, %v799_v62  ;;  %vm805_vm6 = vweird.f32 %v799_v62 }
 0x3e8   : > { %1416 = vtanh.f32 %v795_v2 }
 0x3e9   : > { %v812_v10 = vor.u32 1.1754944e-38, %v811_v5  ;;  %vm810_vm8 = vcmp.eq.f32.partialorder %v809_v7, 8.507059e+37  ;;  %1418 = vpow2.f32 %v1241_v14  ;;  %v940_v5 = vstv %s939_s10 }
 0x3ea   : > { %vm941_vm3 = vcmp.eq.s32.totalorder %v940_v5, 1 }
 0x3ed   : > { %v1415_v1 = vpop.eup %1414 }
 0x3ee   : > { %v801_v3 = vmul.f32 %v1415_v1, %v799_v62  ;;  %vm806_vm5 = vweird.f32 %v1415_v1  ;;  %v1417_v12 = vpop.eup %1416 }
 0x3ef   : > { %vm807_vm7 = vmor %vm805_vm6, %vm806_vm5  ;;  %v1419_v16 = vpop.eup %1418 }
 0x3f0   : > { %v802_v4 = vsub.f32 1.0, %v801_v3  ;;  %v819_v17 = vadd.f32 1.0, %v1419_v16 }
 0x3f2   : > { %v803_v6 = vmul.f32 %v1415_v1, %v802_v4  ;;  %1420 = vrcp.f32 %v819_v17  ;;  %v831_v28 = vand.u32 2147483648, %v819_v17  ;;  %vm825_vm11 = vweird.f32 %v819_v17 }
 0x3f3   : > { %v829_v30 = vand.u32 2147483647, %v819_v17 }
 0x3f4   : > { %v804_v9 = vadd.f32 %v1415_v1, %v803_v6  ;;  %v832_v32 = vor.u32 1.1754944e-38, %v831_v28 }
 0x3f5   : > { %vm830_vm13 = vcmp.eq.f32.partialorder %v829_v30, 8.507059e+37 }
 0x3f6   : > { %v808_v11 = vsel %vm807_vm7, %v1415_v1, %v804_v9 }
 0x3f7   : > { %v813_v13 = vsel %vm810_vm8, %v812_v10, %v808_v11 }
 0x3f8   : > { %v836_v8 = vmul.f32 %v1417_v12, %v813_v13  ;;  %v1421_v18 = vpop.eup %1420  ;;  %v835_v23 = vmul.f32 %v813_v13, %v1919_v43 }
 0x3f9   : > { %v821_v19 = vmul.f32 %v1421_v18, %v819_v17  ;;  %vm826_vm10 = vweird.f32 %v1421_v18 }
 0x3fa   : > { %838 = vrot.lane.b32.xlu0 %v836_v8, %s1690_s1  ;;  %vm827_vm12 = vmor %vm825_vm11, %vm826_vm10 }
 0x3fb   : > { %v822_v20 = vsub.f32 1.0, %v821_v19 }
 0x3fd   : > { %v823_v22 = vmul.f32 %v1421_v18, %v822_v20 }
 0x3ff   : > { %v824_v27 = vadd.f32 %v1421_v18, %v823_v22 }
 0x401   : > { %v828_v31 = vsel %vm827_vm12, %v1421_v18, %v824_v27 }
 0x402   : > { %v833_v34 = vsel %vm830_vm13, %v832_v32, %v828_v31 }
 0x46c   : > { %v839_v24 = vpop.permute.xlu0 %838 }
 0x46d   : > { %v841_v26 = vadd.f32 %v839_v24, %v835_v23 }
 0x46f   : > { %1422 = vtanh.f32 %v841_v26  ;;  %v1937_v29 = vsel %vm848_vm9, %v841_v26, %v1919_v43 }
 0x475   : > { %v1423_v33 = vpop.eup %1422 }
 0x476   : > { %v843_v35 = vmul.f32 %v1423_v33, %v833_v34 }
 0x478   : > { %v1941_v36 = vsel %vm848_vm9, %v843_v35, %v1923_v50  ;;  %v507_v50 = vadd.f32 %v506_v40, %v1893_v25 }
 0x479   : > { %v854_v37 = vpack.c.bf16 %v1941_v36, %v1941_v36 }
 0x47b   : > { %856 = vrot.lane.b32.xlu1 %v854_v37, %s1690_s1 }
 0x4ed   : > { %v857_v38 = vpop.permute.xlu1 %856 }
 0x4ee   : > { %1242 = vmatmul.msk.bf16.vlgmr.msrb.gmra.mxu0 %vm571_vm1, %v857_v38  ;;  %1243 = vmatmul.msk.bf16.vlgmr.msrb.gmra.mxu1 %vm571_vm1, %v857_v38 }
 0x56b   : > { %v870_v42 = vpop.f32.mrf.mxu0  ;;  %v883_v43 = vpop.f32.mrf.mxu1 }
 0x56c   : > { %v887_v44 = vadd.f32 %v870_v42, %v488_v41  ;;  %v888_v52 = vadd.f32 %v883_v43, %v507_v50 }
 0x56e   : > { %v1244_v45 = vmul.f32 -1.442695, %v887_v44  ;;  %v1245_v63 = vmul.f32 -1.442695, %v888_v52 }
 0x570   : > { %1424 = vpow2.f32 %v1244_v45 }
 0x573   : > { %v872_v46 = vpop.f32.mrf.mxu0  ;;  %v885_v47 = vpop.f32.mrf.mxu1 }
 0x576   : > { %v1425_v48 = vpop.eup %1424 }
 0x577   : > { %v892_v49 = vadd.f32 1.0, %v1425_v48 }
 0x579   : > { %1426 = vrcp.f32 %v892_v49  ;;  %v904_v55 = vand.u32 2147483648, %v892_v49  ;;  %v902_v15 = vand.u32 2147483647, %v892_v49  ;;  %vm898_vm15 = vweird.f32 %v892_v49 }
 0x57a   : > { %1428 = vtanh.f32 %v888_v52 }
 0x57b   : > { %v905_v58 = vor.u32 1.1754944e-38, %v904_v55  ;;  %vm903_vm2 = vcmp.eq.f32.partialorder %v902_v15, 8.507059e+37  ;;  %1430 = vpow2.f32 %v1245_v63 }
 0x57f   : > { %v1427_v51 = vpop.eup %1426 }
 0x580   : > { %v894_v53 = vmul.f32 %v1427_v51, %v892_v49  ;;  %vm899_vm14 = vweird.f32 %v1427_v51  ;;  %v1429_v60 = vpop.eup %1428 }
 0x581   : > { %vm900_vm0 = vmor %vm898_vm15, %vm899_vm14  ;;  %v1431_v0 = vpop.eup %1430 }
 0x582   : > { %v895_v54 = vsub.f32 1.0, %v894_v53  ;;  %v912_v1 = vadd.f32 1.0, %v1431_v0 }
 0x584   : > { %v896_v56 = vmul.f32 %v1427_v51, %v895_v54  ;;  %1432 = vrcp.f32 %v912_v1  ;;  %v924_v12 = vand.u32 2147483648, %v912_v1  ;;  %vm918_vm5 = vweird.f32 %v912_v1 }
 0x585   : > { %v922_v13 = vand.u32 2147483647, %v912_v1 }
 0x586   : > { %v897_v57 = vadd.f32 %v1427_v51, %v896_v56  ;;  %v925_v14 = vor.u32 1.1754944e-38, %v924_v12 }
 0x587   : > { %vm923_vm7 = vcmp.eq.f32.partialorder %v922_v13, 8.507059e+37 }
 0x588   : > { %v901_v59 = vsel %vm900_vm0, %v1427_v51, %v897_v57 }
 0x589   : > { %v906_v61 = vsel %vm903_vm2, %v905_v58, %v901_v59 }
 0x58a   : > { %v929_v62 = vmul.f32 %v1429_v60, %v906_v61  ;;  %v928_v25 = vmul.f32 %v906_v61, %v1937_v29  ;;  %v1433_v2 = vpop.eup %1432 }
 0x58b   : > { %v914_v3 = vmul.f32 %v1433_v2, %v912_v1  ;;  %vm919_vm4 = vweird.f32 %v1433_v2 }
 0x58c   : > { %931 = vrot.lane.b32.xlu2 %v929_v62, %s1690_s1  ;;  %vm920_vm6 = vmor %vm918_vm5, %vm919_vm4 }
 0x58d   : > { %v915_v4 = vsub.f32 1.0, %v914_v3 }
 0x58f   : > { %v916_v6 = vmul.f32 %v1433_v2, %v915_v4 }
 0x591   : > { %v917_v10 = vadd.f32 %v1433_v2, %v916_v6 }
 0x593   : > { %v921_v8 = vsel %vm920_vm6, %v1433_v2, %v917_v10 }
 0x594   : > { %v926_v17 = vsel %vm923_vm7, %v925_v14, %v921_v8 }
 0x5e6   : > { %v932_v7 = vpop.permute.xlu2 %931 }
 0x5e7   : > { %v934_v9 = vadd.f32 %v932_v7, %v928_v25 }
 0x5e9   : > { %1434 = vtanh.f32 %v934_v9  ;;  %v943_v11 = vsel %vm941_vm3, %v934_v9, %v1937_v29 }
 0x5ea   : > { %950 = vrot.lane.b32.xlu1 %v943_v11, %s1690_s1 }
 0x5ef   : > { %v1435_v16 = vpop.eup %1434 }
 0x5f0   : > { %v936_v18 = vmul.f32 %v1435_v16, %v926_v17 }
 0x5f2   : > { %v942_v19 = vsel %vm941_vm3, %v936_v18, %v1941_v36 }
 0x5f3   : > { %945 = vrot.lane.b32.xlu0 %v942_v19, %s1690_s1 }
 0x65c   : > { %v951_v20 = vpop.permute.xlu1 %950 }
 0x65d   : > { %953 = vst.msk [vmem:[#allocation4] sm:$0xff] %vm571_vm1, %v951_v20 }
 0x662   : > { %957 = sbr.rel (%p1246_p6) target bundleno = 1791 (0x6ff), region = 72 }
 0x665   : > { %v946_v21 = vpop.permute.xlu0 %945 }
 0x666   : > { %948 = vst.msk [vmem:[#allocation3] sm:$0xff] %vm571_vm1, %v946_v21 }
 0x667   : > { %v966_v22 = vld [vmem:[#allocation13 + $0x38] sm:$0xff]  ;;  %v965_v23 = vld [vmem:[#allocation13 + $0x30] sm:$0xff]  ;;  %v964_v24 = vld [vmem:[#allocation13 + $0x28] sm:$0xff] }
 0x668   : > { %982 = vmatpush.msra.mxu0 %v966_v22  ;;  %v963_v26 = vld [vmem:[#allocation13 + $0x20] sm:$0xff]  ;;  %v962_v27 = vld [vmem:[#allocation13 + $0x18] sm:$0xff]  ;;  %v961_v28 = vld [vmem:[#allocation13 + $0x10] sm:$0xff] }
 0x669   : > { %v960_v29 = vld [vmem:[#allocation13 + $0x8] sm:$0xff]  ;;  %v959_v30 = vld [vmem:[#allocation13] sm:$0xff] }
 0x66a   : > { %983 = vmatpush.msra.mxu0 %v965_v23  ;;  %v1436_v32 = vld [vmem:[%s1995_s5] ss:$0 sm:$0xff] }
 0x66c   : > { %984 = vmatpush.msra.mxu0 %v964_v24 }
 0x66d   : > { %v958_v31 = vld [vmem:[#allocation3] sm:$0xff] }
 0x66e   : > { %985 = vmatpush.msra.mxu0 %v963_v26 }
 0x670   : > { %986 = vmatpush.msra.mxu0 %v962_v27 }
 0x672   : > { %987 = vmatpush.msra.mxu0 %v961_v28 }
 0x674   : > { %988 = vmatpush.msra.mxu0 %v960_v29 }
 0x676   : > { %989 = vmatpush.msra.mxu0 %v959_v30 }
 0x677   : > { %1247 = vmatmul.msk.f32.vlgmr.msra.gmra.mxu0 %vm571_vm1, %v958_v31 }
 0x6f4   : > { %v991_v33 = vpop.f32.mrf.mxu0 }
 0x6f5   : > { %v992_v34 = vadd.f32 %v1436_v32, %v991_v33 }
 0x6f7   : > { %1437 = vtanh.f32 %v992_v34 }
 0x6fd   : > { %v1438_v35 = vpop.eup %1437 }
 0x6fe   : > { %995 = vst.msk [vmem:[#allocation14] sm:$0xff] %vm571_vm1, %v1438_v35 }
 0x6ff PF: > { %s2005_s11 = sadd.s32 4294967295, %s1679_s26   ;;  %s1006_s18 = sshll.u32 %s1996_s6, 4  ;;  %s1007_s18 = int_to_ptr.hbm [resolvable:$true] %s1006_s18 }
 0x700   : > { %p1327_p7 = scmp.eq.s32.totalorder %s2005_s11, 1  ;;  %s1691_s19 = smov [#allocation14]  }
 0x701   : > { %s1004_s30 = sshll.u32 %s1691_s19, 4  ;;  %s1005_s30 = int_to_ptr.vmem [resolvable:$true] %s1004_s30 }
 0x702   : > { %1298 = dma.vmem_to_hbm [thread:$0]  (%p1327_p7), %s1005_s30, 128, %s1007_s18, [#allocation7]  }
 0x703   : > { %1654 = dma.done.wait (%p1327_p7), [#allocation7], 128  }
 0x704   : > { %1656 = vsyncadd (%p1327_p7), [#allocation7], 4294967168 }
 0x705 PF: > { %s22_s26 = sadd.s32 1, %s1679_s26   ;;  %s2006_s21 = smov %s1663_s22 }
 0x706   : > { %p19_p8 = scmp.ge.s32.totalorder %s22_s26, 4   ;;  %s2007_s22 = smov %s1667_s23 }
 0x707   : > { %s2008_s23 = smov %s1820_s17  ;;  %s2009_s24 = smov %s1675_s25 }
 0x708   : > { %s2010_s25 = smov %s2012_s15  ;;  %21 = sbr.rel (!%p19_p8) target bundleno = 9 (0x9), region = 109 }
 0x70d   :  { %1020 = vsyncpa [#allocation6], 1 }
 0x70e   :  { %1022 = vsyncpa [#allocation6 + $0x1], 1 }
 0x70f   :  { %1023 = vsyncpa [#allocation9], 1 }
 0x710   :  { %1024 = vsyncpa [#allocation12], 1 }
 0x711   :  { %1025 = vsyncpa [#allocation7], 1 }
 0x712   :  { %1027 = vsyncpa [#allocation7 + $0x1], 1 }

</bundles_post_ra>
